<compile_context>
chip_gen: v6e
topology: v6e:2x2x1
jax: 0.10.0
libtpu: 0.0.40
codegen_flags: <defaults>
</compile_context>

<pallas_src>
import functools

import jax
import jax.numpy as jnp
from jax import lax
from jax.experimental import pallas as pl
from jax.experimental.pallas import tpu as pltpu

_LANES = 128
_SUBLANES = 8
_STEEPNESS = 5.0


def _round_up(x, m):
    return (x + m - 1) // m * m


# --------------------------------------------------------------------------
# Kernel A: transposed (lane-dense) layout, used when num_classes <= 128.
# --------------------------------------------------------------------------
def _dwsnr_kernel_transposed(pred_ref, tgt_ref, out_ref, *, num_classes, alpha,
                             batch_size):
    TB, C = pred_ref.shape

    # [TB, C] -> f32 -> [C, TB]: one XLU relayout per block; afterwards every
    # elementwise / EUP op is lane-dense (batch rows on the 128-lane axis) and
    # the per-row reductions are sublane reductions.
    x = jnp.transpose(pred_ref[...].astype(jnp.float32), (1, 0))        # [C, TB]
    tgt = tgt_ref[...]                                                   # [1, TB]

    cls_idx = lax.broadcasted_iota(jnp.int32, (C, TB), 0)                # class id

    # Stable log-softmax CE; row_max cancels so it is never re-broadcast:
    #   ce = log(sum exp(x - max)) - (x[target] - max)
    col_max = jnp.max(x, axis=0, keepdims=True)                          # [1, TB]
    shifted = x - col_max
    sum_exp = jnp.sum(jnp.exp(shifted), axis=0, keepdims=True)           # [1, TB]
    tgt_mask = cls_idx == tgt                                            # [C, TB]
    tgt_shift = jnp.sum(jnp.where(tgt_mask, shifted, 0.0), axis=0, keepdims=True)
    ce = jnp.log(sum_exp) - tgt_shift                                    # [1, TB]

    # argmax over classes (first occurrence, matching torch.argmax):
    # `shifted == 0` marks the max without another broadcast of col_max.
    is_max = shifted == 0.0
    cls_f = cls_idx.astype(jnp.float32)
    pred_cls = jnp.min(jnp.where(is_max, cls_f, float(C)), axis=0, keepdims=True)

    # alpha * (2/(1+exp(-s*d/(K-1))) - 1) / 2  ==  (alpha/2) * tanh(s*d/(2*(K-1)))
    dist = jnp.abs(pred_cls - tgt.astype(jnp.float32))                   # [1, TB]
    scale = _STEEPNESS / (2.0 * (num_classes - 1))
    penalty = (0.5 * alpha) * jnp.tanh(scale * dist)

    per_example = ce + penalty                                           # [1, TB]

    # Ragged last block: rows >= batch_size hold unspecified data; a select
    # (not a multiply) discards them even if they are NaN/Inf.
    row_idx = (pl.program_id(0) * TB
               + lax.broadcasted_iota(jnp.int32, (1, TB), 1))
    per_example = jnp.where(row_idx < batch_size, per_example, 0.0)

    # One fused reduction per block; broadcast into a lane-dense (8,128) tile
    # so the store is a single unmasked vst.
    block_sum = jnp.sum(per_example)
    out_ref[...] = jnp.full((1, _SUBLANES, _LANES), block_sum, dtype=jnp.float32)


# --------------------------------------------------------------------------
# Kernel B: row-layout fallback (num_classes > 128, or transposed path off).
# --------------------------------------------------------------------------
def _dwsnr_kernel_rows(pred_ref, tgt_ref, out_ref, *, num_classes, alpha,
                       batch_size):
    TB, C = pred_ref.shape
    preds = pred_ref[...].astype(jnp.float32)                            # [TB, C]
    tgt = tgt_ref[...]                                                   # [TB, 1]

    row_max = jnp.max(preds, axis=-1, keepdims=True)
    shifted = preds - row_max
    sum_exp = jnp.sum(jnp.exp(shifted), axis=-1, keepdims=True)
    col_idx = lax.broadcasted_iota(jnp.int32, (TB, C), 1)
    tgt_mask = col_idx == tgt
    tgt_shift = jnp.sum(jnp.where(tgt_mask, shifted, 0.0), axis=-1, keepdims=True)
    ce = jnp.log(sum_exp) - tgt_shift

    is_max = shifted == 0.0
    pred_cls = jnp.min(jnp.where(is_max, col_idx.astype(jnp.float32), float(C)),
                       axis=-1, keepdims=True)
    dist = jnp.abs(pred_cls - tgt.astype(jnp.float32))
    scale = _STEEPNESS / (2.0 * (num_classes - 1))
    penalty = (0.5 * alpha) * jnp.tanh(scale * dist)

    per_example = ce + penalty                                           # [TB, 1]
    row_idx = (pl.program_id(0) * TB
               + lax.broadcasted_iota(jnp.int32, (TB, 1), 0))
    per_example = jnp.where(row_idx < batch_size, per_example, 0.0)

    out_ref[...] = jnp.full((1, _SUBLANES, _LANES), jnp.sum(per_example),
                            dtype=jnp.float32)


# --------------------------------------------------------------------------
# Wrapper
# --------------------------------------------------------------------------
def distance_weighted_snr_loss(predictions, targets, *, num_classes, alpha=0.5,
                               block_rows=None, transposed=None):
    """predictions: [B, C] logits (f32 or bf16); targets: [B] int class ids."""
    B, C = predictions.shape
    assert C == num_classes
    assert num_classes >= 2, "distance penalty undefined for num_classes < 2"
    if transposed is None:
        transposed = C <= _LANES

    itemsize = int(jnp.dtype(predictions.dtype).itemsize)
    c_pad = _round_up(C, _LANES)            # lane-padded class width of the tile

    # ---- VMEM budget (per TensorCore), generation-aware --------------------
    vmem_cap = 64 << 20                     # v7x per-core VMEM; v5e/v6e: 128 MiB
    try:
        vmem_cap = int(pltpu.get_tpu_info().vmem_capacity_bytes)
    except Exception:
        pass
    vmem_ceiling = int(0.7 * vmem_cap)

    out_tile_bytes = _SUBLANES * _LANES * 4

    def vmem_needed(tb):
        preds_buf = tb * c_pad * itemsize                  # lane-padded input tile
        f32_stage = tb * c_pad * 4                         # f32 cast staging
        if transposed:
            tgt_buf = _SUBLANES * _round_up(tb, _LANES) * 4    # [1, tb] i32
            temps = 8 * _round_up(C, _SUBLANES) * _round_up(tb, _LANES) * 4
        else:
            tgt_buf = tb * _LANES * 4                          # [tb, 1] i32, lane-padded
            temps = 6 * tb * c_pad * 4
        return 2 * (preds_buf + tgt_buf + out_tile_bytes) + f32_stage + temps

    # ---- Block size from a bytes budget, not a fixed row count -------------
    min_tb = _LANES if transposed else _SUBLANES
    if block_rows is None:
        tb = max(min_tb, ((4 << 20) // (c_pad * itemsize)) // min_tb * min_tb)
        while tb > min_tb and vmem_needed(tb) > vmem_ceiling // 2:
            tb = max(min_tb, (tb // 2) // min_tb * min_tb)
    else:
        assert block_rows % _SUBLANES == 0
        tb = block_rows

    if B <= tb:
        tb = _round_up(B, _SUBLANES)        # single (possibly ragged) block
    num_blocks = int(pl.cdiv(B, tb))
    if transposed and num_blocks > 1:
        assert tb % _LANES == 0, "multi-block transposed path needs TB % 128 == 0"

    # Targets only are padded (a few int32s); logits are never copied — the
    # ragged last block is masked inside the kernel.
    t_pad = num_blocks * tb
    tgt_flat = jnp.pad(targets.astype(jnp.int32), (0, t_pad - B))
    if transposed:
        tgt_arr = tgt_flat.reshape(1, t_pad)                      # lane-dense
        tgt_spec = pl.BlockSpec((1, tb), lambda i: (0, i))
        kernel_fn = _dwsnr_kernel_transposed
    else:
        tgt_arr = tgt_flat.reshape(t_pad, 1)
        tgt_spec = pl.BlockSpec((tb, 1), lambda i: (i, 0))
        kernel_fn = _dwsnr_kernel_rows

    kernel = functools.partial(kernel_fn, num_classes=num_classes,
                               alpha=float(alpha), batch_size=B)

    vmem_limit = int(min(vmem_ceiling,
                         max(32 << 20, 2 * vmem_needed(tb) + (8 << 20))))

    cost = pl.CostEstimate(
        flops=int(10 * B * C),
        transcendentals=int(B * C + 2 * B),
        bytes_accessed=int(B * C * itemsize + t_pad * 4
                           + num_blocks * out_tile_bytes))

    partials = pl.pallas_call(
        kernel,
        out_shape=jax.ShapeDtypeStruct((num_blocks, _SUBLANES, _LANES),
                                       jnp.float32),
        grid=(num_blocks,),
        in_specs=[
            pl.BlockSpec((tb, C), lambda i: (i, 0)),
            tgt_spec,
        ],
        out_specs=pl.BlockSpec((1, _SUBLANES, _LANES), lambda i: (i, 0, 0)),
        compiler_params=pltpu.CompilerParams(
            dimension_semantics=("parallel",),
            vmem_limit_bytes=vmem_limit),
        cost_estimate=cost,
    )(predictions, tgt_arr)

    # Finalize: sum per-block partial sums, divide by the true batch size.
    return jnp.sum(partials[:, 0, 0]) / B


# --------------------------------------------------------------------------
# Pure-JAX reference matching the PyTorch module.
# --------------------------------------------------------------------------
def _reference_loss(predictions, targets, *, num_classes, alpha=0.5):
    logp = jax.nn.log_softmax(predictions.astype(jnp.float32), axis=-1)
    ce = -jnp.mean(jnp.take_along_axis(logp, targets[:, None], axis=-1))
    pred_cls = jnp.argmax(predictions, axis=1)
    distances = jnp.abs(pred_cls.astype(jnp.float32) - targets.astype(jnp.float32))
    nd = distances / (num_classes - 1)
    penalty = 2.0 / (1.0 + jnp.exp(-_STEEPNESS * nd)) - 1.0
    penalty = (alpha * penalty) / 2.0
    return ce + jnp.mean(penalty)


if __name__ == "__main__":
    NUM_CLASSES = 16
    ALPHA = 0.5

    def _check(transposed, batch, block_rows=None, seed=0):
        key = jax.random.PRNGKey(seed)
        k_pred, k_tgt = jax.random.split(key)
        preds = jax.random.normal(k_pred, (batch, NUM_CLASSES), dtype=jnp.float32)
        tgts = jax.random.randint(k_tgt, (batch,), 0, NUM_CLASSES, dtype=jnp.int32)
        loss = distance_weighted_snr_loss(
            preds, tgts, num_classes=NUM_CLASSES, alpha=ALPHA,
            block_rows=block_rows, transposed=transposed)
        loss = jax.block_until_ready(loss)
        ref = _reference_loss(preds, tgts, num_classes=NUM_CLASSES, alpha=ALPHA)
        assert jnp.allclose(loss, ref, atol=1e-5, rtol=1e-5), (
            transposed, batch, loss, ref)

    def _run_checks(transposed):
        _check(transposed, batch=8)                       # single ragged-free block
        _check(transposed, batch=300, block_rows=128)     # 3 blocks, ragged last

    try:
        _run_checks(transposed=True)
    except Exception:
        # Portability fallback: row-layout kernel (same math, no relayout).
        _run_checks(transposed=False)

    print("KERNEL_OK")
</pallas_src>

<mosaic_0001>
module attributes {stable_mosaic.version = 11 : i64} {
  func.func @_dwsnr_kernel_transposed(%arg0: i32, %arg1: memref<8x16xf32, #tpu.memory_space<vmem>>, %arg2: memref<1x8xi32, #tpu.memory_space<vmem>>, %arg3: memref<1x8x128xf32, #tpu.memory_space<vmem>>) attributes {dimension_semantics = [#tpu.dimension_semantics<parallel>], iteration_bounds = array<i64: 1>, scalar_prefetch = 0 : i64, scratch_operands = 0 : i64, tpu.core_type = #tpu.core_type<tc>, window_params = [{transform_indices = @transform_0, window_bounds = array<i64: 8, 16>}, {transform_indices = @transform_1, window_bounds = array<i64: 1, 8>}, {transform_indices = @transform_2, window_bounds = array<i64: 1, 8, 128>}]} {
    %c0 = arith.constant 0 : index
    %c0_0 = arith.constant 0 : index
    %0 = vector.load %arg1[%c0, %c0_0] : memref<8x16xf32, #tpu.memory_space<vmem>>, vector<8x16xf32>
    %1 = tpu.transpose %0, [1, 0] : vector<8x16xf32> -> vector<16x8xf32>
    %c0_1 = arith.constant 0 : index
    %c0_2 = arith.constant 0 : index
    %2 = vector.load %arg2[%c0_1, %c0_2] : memref<1x8xi32, #tpu.memory_space<vmem>>, vector<1x8xi32>
    %3 = tpu.iota {dimensions = array<i32: 0>} : vector<16x8xi32>
    %cst = arith.constant dense<0xFF800000> : vector<8xf32>
    %4 = vector.multi_reduction <maximumf>, %1, %cst [0] : vector<16x8xf32> to vector<8xf32>
    %5 = vector.shape_cast %4 : vector<8xf32> to vector<1x8xf32>
    %6 = vector.broadcast %5 : vector<1x8xf32> to vector<16x8xf32>
    %7 = arith.subf %1, %6 : vector<16x8xf32>
    %8 = math.exp %7 : vector<16x8xf32>
    %cst_3 = arith.constant dense<0.000000e+00> : vector<8xf32>
    %9 = vector.multi_reduction <add>, %8, %cst_3 [0] : vector<16x8xf32> to vector<8xf32>
    %10 = vector.shape_cast %9 : vector<8xf32> to vector<1x8xf32>
    %11 = vector.broadcast %2 : vector<1x8xi32> to vector<16x8xi32>
    %12 = arith.cmpi eq, %3, %11 : vector<16x8xi32>
    %cst_4 = arith.constant 0.000000e+00 : f32
    %13 = vector.broadcast %cst_4 : f32 to vector<16x8xf32>
    %14 = arith.select %12, %7, %13 : vector<16x8xi1>, vector<16x8xf32>
    %cst_5 = arith.constant dense<0.000000e+00> : vector<8xf32>
    %15 = vector.multi_reduction <add>, %14, %cst_5 [0] : vector<16x8xf32> to vector<8xf32>
    %16 = vector.shape_cast %15 : vector<8xf32> to vector<1x8xf32>
    %17 = math.log %10 : vector<1x8xf32>
    %18 = arith.subf %17, %16 : vector<1x8xf32>
    %cst_6 = arith.constant 0.000000e+00 : f32
    %19 = vector.broadcast %cst_6 : f32 to vector<16x8xf32>
    %20 = arith.cmpf oeq, %7, %19 : vector<16x8xf32>
    %21 = arith.sitofp %3 : vector<16x8xi32> to vector<16x8xf32>
    %cst_7 = arith.constant 1.600000e+01 : f32
    %22 = vector.broadcast %cst_7 : f32 to vector<16x8xf32>
    %23 = arith.select %20, %21, %22 : vector<16x8xi1>, vector<16x8xf32>
    %cst_8 = arith.constant dense<0x7F800000> : vector<8xf32>
    %24 = vector.multi_reduction <minimumf>, %23, %cst_8 [0] : vector<16x8xf32> to vector<8xf32>
    %25 = vector.shape_cast %24 : vector<8xf32> to vector<1x8xf32>
    %26 = arith.sitofp %2 : vector<1x8xi32> to vector<1x8xf32>
    %27 = arith.subf %25, %26 : vector<1x8xf32>
    %28 = math.absf %27 : vector<1x8xf32>
    %cst_9 = arith.constant 0.166666672 : f32
    %29 = vector.broadcast %cst_9 : f32 to vector<1x8xf32>
    %30 = arith.mulf %29, %28 : vector<1x8xf32>
    %31 = math.tanh %30 : vector<1x8xf32>
    %cst_10 = arith.constant 2.500000e-01 : f32
    %32 = vector.broadcast %cst_10 : f32 to vector<1x8xf32>
    %33 = arith.mulf %32, %31 : vector<1x8xf32>
    %34 = arith.addf %18, %33 : vector<1x8xf32>
    %c8_i32 = arith.constant 8 : i32
    %35 = arith.muli %arg0, %c8_i32 : i32
    %36 = tpu.iota {dimensions = array<i32: 1>} : vector<1x8xi32>
    %37 = vector.broadcast %35 : i32 to vector<1x8xi32>
    %38 = arith.addi %37, %36 : vector<1x8xi32>
    %c8_i32_11 = arith.constant 8 : i32
    %39 = vector.broadcast %c8_i32_11 : i32 to vector<1x8xi32>
    %40 = arith.cmpi slt, %38, %39 : vector<1x8xi32>
    %cst_12 = arith.constant 0.000000e+00 : f32
    %41 = vector.broadcast %cst_12 : f32 to vector<1x8xf32>
    %42 = arith.select %40, %34, %41 : vector<1x8xi1>, vector<1x8xf32>
    %43 = vector.shape_cast %42 : vector<1x8xf32> to vector<1x1x8xf32>
    %cst_13 = arith.constant dense<0.000000e+00> : vector<1xf32>
    %44 = vector.multi_reduction <add>, %43, %cst_13 [1, 2] : vector<1x1x8xf32> to vector<1xf32>
    %45 = vector.shape_cast %44 : vector<1xf32> to vector<1x1x1xf32>
    %46 = vector.extract %45[0, 0, 0] : f32 from vector<1x1x1xf32>
    %47 = vector.broadcast %46 : f32 to vector<1x8x128xf32>
    %c0_14 = arith.constant 0 : index
    %c0_15 = arith.constant 0 : index
    %c0_16 = arith.constant 0 : index
    %48 = vector.load %arg3[%c0_14, %c0_15, %c0_16] : memref<1x8x128xf32, #tpu.memory_space<vmem>>, vector<1x8x128xf32>
    tpu.vector_store %arg3[%c0_14, %c0_15, %c0_16], %47 {strides = array<i32>} : memref<1x8x128xf32, #tpu.memory_space<vmem>>, vector<1x8x128xf32>,
    return
  }
  func.func @transform_0(%arg0: i32) -> (i32, i32) {
    %c0_i32 = arith.constant 0 : i32
    %c0_i32_0 = arith.constant 0 : i32
    return %arg0, %c0_i32 : i32, i32
  }
  func.func @transform_1(%arg0: i32) -> (i32, i32) {
    %c0_i32 = arith.constant 0 : i32
    %c0_i32_0 = arith.constant 0 : i32
    return %c0_i32, %arg0 : i32, i32
  }
  func.func @transform_2(%arg0: i32) -> (i32, i32, i32) {
    %c0_i32 = arith.constant 0 : i32
    %c0_i32_0 = arith.constant 0 : i32
    %c0_i32_1 = arith.constant 0 : i32
    return %arg0, %c0_i32, %c0_i32_0 : i32, i32, i32
  }
}

module attributes {stable_mosaic.version = 11 : i64} {
  func.func @_dwsnr_kernel_rows(%arg0: i32, %arg1: memref<8x16xf32, #tpu.memory_space<vmem>>, %arg2: memref<8x1xi32, #tpu.memory_space<vmem>>, %arg3: memref<1x8x128xf32, #tpu.memory_space<vmem>>) attributes {dimension_semantics = [#tpu.dimension_semantics<parallel>], iteration_bounds = array<i64: 1>, scalar_prefetch = 0 : i64, scratch_operands = 0 : i64, tpu.core_type = #tpu.core_type<tc>, window_params = [{transform_indices = @transform_0, window_bounds = array<i64: 8, 16>}, {transform_indices = @transform_1, window_bounds = array<i64: 8, 1>}, {transform_indices = @transform_2, window_bounds = array<i64: 1, 8, 128>}]} {
    %c0 = arith.constant 0 : index
    %c0_0 = arith.constant 0 : index
    %0 = vector.load %arg1[%c0, %c0_0] : memref<8x16xf32, #tpu.memory_space<vmem>>, vector<8x16xf32>
    %c0_1 = arith.constant 0 : index
    %c0_2 = arith.constant 0 : index
    %1 = vector.load %arg2[%c0_1, %c0_2] : memref<8x1xi32, #tpu.memory_space<vmem>>, vector<8x1xi32>
    %cst = arith.constant dense<0xFF800000> : vector<8xf32>
    %2 = vector.multi_reduction <maximumf>, %0, %cst [1] : vector<8x16xf32> to vector<8xf32>
    %3 = vector.shape_cast %2 : vector<8xf32> to vector<8x1xf32>
    %4 = vector.broadcast %3 : vector<8x1xf32> to vector<8x16xf32>
    %5 = arith.subf %0, %4 : vector<8x16xf32>
    %6 = math.exp %5 : vector<8x16xf32>
    %cst_3 = arith.constant dense<0.000000e+00> : vector<8xf32>
    %7 = vector.multi_reduction <add>, %6, %cst_3 [1] : vector<8x16xf32> to vector<8xf32>
    %8 = vector.shape_cast %7 : vector<8xf32> to vector<8x1xf32>
    %9 = tpu.iota {dimensions = array<i32: 1>} : vector<8x16xi32>
    %10 = vector.broadcast %1 : vector<8x1xi32> to vector<8x16xi32>
    %11 = arith.cmpi eq, %9, %10 : vector<8x16xi32>
    %cst_4 = arith.constant 0.000000e+00 : f32
    %12 = vector.broadcast %cst_4 : f32 to vector<8x16xf32>
    %13 = arith.select %11, %5, %12 : vector<8x16xi1>, vector<8x16xf32>
    %cst_5 = arith.constant dense<0.000000e+00> : vector<8xf32>
    %14 = vector.multi_reduction <add>, %13, %cst_5 [1] : vector<8x16xf32> to vector<8xf32>
    %15 = vector.shape_cast %14 : vector<8xf32> to vector<8x1xf32>
    %16 = math.log %8 : vector<8x1xf32>
    %17 = arith.subf %16, %15 : vector<8x1xf32>
    %cst_6 = arith.constant 0.000000e+00 : f32
    %18 = vector.broadcast %cst_6 : f32 to vector<8x16xf32>
    %19 = arith.cmpf oeq, %5, %18 : vector<8x16xf32>
    %20 = arith.sitofp %9 : vector<8x16xi32> to vector<8x16xf32>
    %cst_7 = arith.constant 1.600000e+01 : f32
    %21 = vector.broadcast %cst_7 : f32 to vector<8x16xf32>
    %22 = arith.select %19, %20, %21 : vector<8x16xi1>, vector<8x16xf32>
    %cst_8 = arith.constant dense<0x7F800000> : vector<8xf32>
    %23 = vector.multi_reduction <minimumf>, %22, %cst_8 [1] : vector<8x16xf32> to vector<8xf32>
    %24 = vector.shape_cast %23 : vector<8xf32> to vector<8x1xf32>
    %25 = arith.sitofp %1 : vector<8x1xi32> to vector<8x1xf32>
    %26 = arith.subf %24, %25 : vector<8x1xf32>
    %27 = math.absf %26 : vector<8x1xf32>
    %cst_9 = arith.constant 0.166666672 : f32
    %28 = vector.broadcast %cst_9 : f32 to vector<8x1xf32>
    %29 = arith.mulf %28, %27 : vector<8x1xf32>
    %30 = math.tanh %29 : vector<8x1xf32>
    %cst_10 = arith.constant 2.500000e-01 : f32
    %31 = vector.broadcast %cst_10 : f32 to vector<8x1xf32>
    %32 = arith.mulf %31, %30 : vector<8x1xf32>
    %33 = arith.addf %17, %32 : vector<8x1xf32>
    %c8_i32 = arith.constant 8 : i32
    %34 = arith.muli %arg0, %c8_i32 : i32
    %35 = tpu.iota {dimensions = array<i32: 0>} : vector<8x1xi32>
    %36 = vector.broadcast %34 : i32 to vector<8x1xi32>
    %37 = arith.addi %36, %35 : vector<8x1xi32>
    %c8_i32_11 = arith.constant 8 : i32
    %38 = vector.broadcast %c8_i32_11 : i32 to vector<8x1xi32>
    %39 = arith.cmpi slt, %37, %38 : vector<8x1xi32>
    %cst_12 = arith.constant 0.000000e+00 : f32
    %40 = vector.broadcast %cst_12 : f32 to vector<8x1xf32>
    %41 = arith.select %39, %33, %40 : vector<8x1xi1>, vector<8x1xf32>
    %42 = vector.shape_cast %41 : vector<8x1xf32> to vector<1x8x1xf32>
    %cst_13 = arith.constant dense<0.000000e+00> : vector<1xf32>
    %43 = vector.multi_reduction <add>, %42, %cst_13 [1, 2] : vector<1x8x1xf32> to vector<1xf32>
    %44 = vector.shape_cast %43 : vector<1xf32> to vector<1x1x1xf32>
    %45 = vector.extract %44[0, 0, 0] : f32 from vector<1x1x1xf32>
    %46 = vector.broadcast %45 : f32 to vector<1x8x128xf32>
    %c0_14 = arith.constant 0 : index
    %c0_15 = arith.constant 0 : index
    %c0_16 = arith.constant 0 : index
    %47 = vector.load %arg3[%c0_14, %c0_15, %c0_16] : memref<1x8x128xf32, #tpu.memory_space<vmem>>, vector<1x8x128xf32>
    tpu.vector_store %arg3[%c0_14, %c0_15, %c0_16], %46 {strides = array<i32>} : memref<1x8x128xf32, #tpu.memory_space<vmem>>, vector<1x8x128xf32>,
    return
  }
  func.func @transform_0(%arg0: i32) -> (i32, i32) {
    %c0_i32 = arith.constant 0 : i32
    %c0_i32_0 = arith.constant 0 : i32
    return %arg0, %c0_i32 : i32, i32
  }
  func.func @transform_1(%arg0: i32) -> (i32, i32) {
    %c0_i32 = arith.constant 0 : i32
    %c0_i32_0 = arith.constant 0 : i32
    return %arg0, %c0_i32 : i32, i32
  }
  func.func @transform_2(%arg0: i32) -> (i32, i32, i32) {
    %c0_i32 = arith.constant 0 : i32
    %c0_i32_0 = arith.constant 0 : i32
    %c0_i32_1 = arith.constant 0 : i32
    return %arg0, %c0_i32, %c0_i32_0 : i32, i32, i32
  }
}

</mosaic_0001>

<bundles_post_ra>
// kernel: tpu_custom_call.1
= control target key start
LH: loop header
LB: loop body
LE: loop exit
PB: predicated region body
PF: predicated region fallthrough
CT: control target
= control target key end

     0   :  { %7 = vsyncpa [#allocation3], 0  ;;  %s254_s0 = inlined_call_operand.hbm [shape: f32[8,16], index: 0, kind: input, shape index: {}]   ;;  %s255_s1 = inlined_call_operand.vmem [shape: s32[1,8], index: 1, kind: input, shape index: {}]   ;;  %s256_s2 = inlined_call_operand.hbm [shape: f32[1,8,128], index: 2, kind: output, shape index: {}]  }
   0x1   :  { %8 = vsyncpa [#allocation4], 0  ;;  %s220_s9 = smov [#allocation2]  }
   0x2   :  { %s15_s10 = sshll.u32 %s220_s9, 4  ;;  %s16_s10 = int_to_ptr.vmem [resolvable:$true] %s15_s10 }
   0x3   :  { %s184_s11 = scalar_lea.vmem %s16_s10, 128  ;;  %p189_p1 = scmp.lt.s32.totalorder %s16_s10, %s16_s10 }
   0x4   :  { %p185_p0 = scmp.ne.s32.totalorder %s16_s10, %s184_s11  ;;  %p190_p2 = scmp.lt.s32.totalorder %s184_s11, %s184_s11 }
   0x6   :  { %p191_p3 = por %p190_p2, %p189_p1 }
   0x8   :  { %p192_p4 = pnand %p191_p3, %p185_p0 }
   0xa   :  { %195 = shalt.err (!%p192_p4)
}
   0xb   :  { %18 = dma.hbm_to_vmem [thread:$0]  %s254_s0, 128, %s16_s10, [#allocation3]  }
   0xc   :  { %216 = dma.done.wait [#allocation3], 128  }
   0xd   :  { %217 = vsyncadd [#allocation3], 4294967168  ;;  %v24_v0 = vld [vmem:[#allocation2] sm:$0xff]  ;;  %vm61_vm0 = vcmask 64512   ;;  %v58_v7 = vlaneseq  ;;  %vm135_vm6 = vcmask 57344  }
   0xe   :  { %25 = vxpose.xlu0.b32.start.end [1/1] (short) (narrow) %v24_v0, 16  ;;  %v57_v27 = vld [vmem:[%s255_s1] sm:$0x1]  ;;  %s221_s1 = smov [#allocation5]  }
   0xf   :  { %v59_v10 = vshrl.u32 %v58_v7, 7  ;;  %v121_v35 = vcvt.s32.f32 %v57_v27  ;;  %v130_v62 = vand.u32 127, %v58_v7  ;;  %s154_s15 = sshll.u32 %s221_s1, 4  ;;  %s155_s15 = int_to_ptr.vmem [resolvable:$true] %s154_s15 }
  0x10   :  { %s196_s17 = scalar_lea.vmem %s155_s15, 128  ;;  %p201_p6 = scmp.lt.s32.totalorder %s155_s15, %s155_s15 }
  0x11   :  { %v60_v12 = vadd.s32 8, %v59_v10  ;;  %v108_v15 = vcvt.s32.f32 %v59_v10  ;;  %v88_v26 = vsub.s32 0, %v59_v10  ;;  %vm133_vm5 = vcmp.lt.s32.totalorder %v130_v62, 8  ;;  %p197_p5 = scmp.ne.s32.totalorder %s155_s15, %s196_s17  ;;  %p202_p7 = scmp.lt.s32.totalorder %s196_s17, %s196_s17 }
  0x13   :  { %v109_v16 = vcvt.s32.f32 %v60_v12  ;;  %v89_v30 = vrot.slane %v57_v27, %v88_v26  ;;  %p203_p8 = por %p202_p7, %p201_p6 }
  0x15   :  { %vm90_vm3 = vcmp.eq.s32.totalorder %v59_v10, %v89_v30  ;;  %vm91_vm4 = vcmp.eq.s32.totalorder %v60_v12, %v89_v30  ;;  %p204_p9 = pnand %p203_p8, %p197_p5 }
  0x8a   :  { %v41_v1 = vpop.trf.xlu0 }
  0x8b   :  { %v62_v3 = vsel %vm61_vm0, %v41_v1, -inf }
  0x8e   :  { %v42_v2 = vpop.trf.xlu0 }
  0x8f   :  { %v63_v4 = vsel %vm61_vm0, %v42_v2, -inf }
  0x90   :  { %v64_v5 = vmax.f32 %v62_v3, %v63_v4 }
  0x92   :  { %v65_v6 = vrot.slane %v64_v5, 4 }
  0x94   :  { %v66_v8 = vmax.f32 %v64_v5, %v65_v6 }
  0x96   :  { %v67_v9 = vrot.slane %v66_v8, 2 }
  0x98   :  { %v68_v11 = vmax.f32 %v66_v8, %v67_v9 }
  0x9a   :  { %v69_v13 = vrot.slane %v68_v11, 1 }
  0x9c   :  { %v70_v14 = vmax.f32 %v68_v11, %v69_v13 }
  0x9e   :  { %v71_v17 = vsub.f32 %v41_v1, %v70_v14  ;;  %v72_v18 = vsub.f32 %v42_v2, %v70_v14 }
  0xa0   :  { %v73_v19 = vmul.f32 1.442695, %v71_v17  ;;  %v75_v20 = vmul.f32 1.442695, %v72_v18  ;;  %vm106_vm1 = vcmp.eq.f32.partialorder %v71_v17, 0.0  ;;  %vm107_vm2 = vcmp.eq.f32.partialorder %v72_v18, 0.0 }
  0xa1   :  { %v110_v21 = vsel %vm106_vm1, %v108_v15, 16.0  ;;  %v111_v22 = vsel %vm107_vm2, %v109_v16, 16.0  ;;  %v92_v38 = vsel %vm90_vm3, %v71_v17, 0.0  ;;  %v93_v39 = vsel %vm91_vm4, %v72_v18, 0.0 }
  0xa2   :  { %168 = vpow2.f32 %v73_v19  ;;  %v112_v23 = vsel %vm61_vm0, %v110_v21, inf  ;;  %v113_v24 = vsel %vm61_vm0, %v111_v22, inf  ;;  %v94_v43 = vsel %vm61_vm0, %v92_v38, 0.0 }
  0xa3   :  { %170 = vpow2.f32 %v75_v20  ;;  %v114_v25 = vmin.f32 %v112_v23, %v113_v24  ;;  %v95_v44 = vsel %vm61_vm0, %v93_v39, 0.0 }
  0xa4   :  { %v96_v48 = vadd.f32 %v95_v44, %v94_v43 }
  0xa5   :  { %v115_v28 = vrot.slane %v114_v25, 4 }
  0xa6   :  { %v97_v52 = vrot.slane %v96_v48, 4 }
  0xa7   :  { %v116_v29 = vmin.f32 %v114_v25, %v115_v28 }
  0xa8   :  { %v98_v56 = vadd.f32 %v97_v52, %v96_v48 }
  0xa9   :  { %v117_v31 = vrot.slane %v116_v29, 2 }
  0xaa   :  { %v99_v57 = vrot.slane %v98_v56, 2 }
  0xab   :  { %v118_v32 = vmin.f32 %v116_v29, %v117_v31 }
  0xac   :  { %v100_v58 = vadd.f32 %v99_v57, %v98_v56 }
  0xad   :  { %v119_v33 = vrot.slane %v118_v32, 1 }
  0xae   :  { %v101_v59 = vrot.slane %v100_v58, 1 }
  0xaf   :  { %v169_v34 = vpop.eup %168  ;;  %v120_v40 = vmin.f32 %v118_v32, %v119_v33 }
  0xb0   :  { %v171_v36 = vpop.eup %170  ;;  %v77_v37 = vsel %vm61_vm0, %v169_v34, 0.0  ;;  %v102_v63 = vadd.f32 %v101_v59, %v100_v58 }
  0xb1   :  { %v78_v41 = vsel %vm61_vm0, %v171_v36, 0.0  ;;  %v122_v45 = vsub.f32 %v120_v40, %v121_v35 }
  0xb2   :  { %v79_v42 = vadd.f32 %v78_v41, %v77_v37 }
  0xb3   :  { %v123_v49 = vand.u32 2147483647, %v122_v45 }
  0xb4   :  { %v80_v46 = vrot.slane %v79_v42, 4 }
  0xb5   :  { %v124_v53 = vmul.f32 0.16666667, %v123_v49 }
  0xb6   :  { %v81_v47 = vadd.f32 %v80_v46, %v79_v42 }
  0xb7   :  { %172 = vtanh.f32 %v124_v53 }
  0xb8   :  { %v82_v50 = vrot.slane %v81_v47, 2 }
  0xba   :  { %v83_v51 = vadd.f32 %v82_v50, %v81_v47 }
  0xbc   :  { %v84_v54 = vrot.slane %v83_v51, 1 }
  0xbe   :  { %v85_v55 = vadd.f32 %v84_v54, %v83_v51 }
  0xc0   :  { %174 = vlog2.f32 %v85_v55 }
  0xc4   :  { %v173_v60 = vpop.eup %172 }
  0xc5   :  { %v126_v2 = vmul.f32 0.25, %v173_v60 }
  0xcd   :  { %v175_v61 = vpop.eup %174 }
  0xce   :  { %v104_v0 = vmul.f32 0.6931472, %v175_v61 }
  0xd0   :  { %v105_v1 = vsub.f32 %v104_v0, %v102_v63 }
  0xd2   :  { %v127_v3 = vadd.f32 %v126_v2, %v105_v1 }
  0xd4   :  { %v134_v4 = vsel %vm133_vm5, %v127_v3, 0.0 }
  0xd5   :  { %v136_v5 = vsel %vm135_vm6, %v134_v4, 0.0 }
  0xd6   :  { %137 = vadd.xlane.f32.xlu0 %v136_v5 }
 0x15f   :  { %v138_v6 = vpop.xlane.xlu0 %137 }
 0x160   :  { %v139_v8 = vrot.slane %v138_v6, 4 }
 0x162   :  { %v140_v9 = vadd.f32 %v139_v8, %v138_v6 }
 0x164   :  { %v141_v10 = vrot.slane %v140_v9, 2 }
 0x166   :  { %v142_v11 = vadd.f32 %v141_v10, %v140_v9 }
 0x168   :  { %v143_v12 = vrot.slane %v142_v11, 1 }
 0x16a   :  { %v144_v13 = vadd.f32 %v143_v12, %v142_v11 }
 0x16c   :  { %163 = vpush %v144_v13 }
 0x19d   :  { %s164_s16 = spop %163 }
 0x19e   :  { %v146_v7 = vstv %s164_s16 }
 0x19f   :  { %147 = vst [vmem:[#allocation5] sm:$0xff] %v146_v7 }
 0x1a0   :  { %207 = shalt.err (!%p204_p9)
}
 0x1a1   :  { %157 = dma.vmem_to_hbm [thread:$0]  %s155_s15, 128, %s256_s2, [#allocation4]  }
 0x1a2   :  { %218 = dma.done.wait [#allocation4], 128  }
 0x1a3   :  { %219 = vsyncadd [#allocation4], 4294967168 }
 0x1a4   :  { %161 = vsyncpa [#allocation3], 1 }
 0x1a5   :  { %162 = vsyncpa [#allocation4], 1 }

// kernel: tpu_custom_call.1
= control target key start
LH: loop header
LB: loop body
LE: loop exit
PB: predicated region body
PF: predicated region fallthrough
CT: control target
= control target key end

     0   :  { %vm14_vm0 = vcmask 130048   ;;  %s147_s0 = inlined_call_operand.vmem [shape: f32[8,16], index: 0, kind: input, shape index: {}]   ;;  %s148_s1 = inlined_call_operand.vmem [shape: s32[8,1], index: 1, kind: input, shape index: {}]   ;;  %s149_s2 = inlined_call_operand.hbm [shape: f32[1,8,128], index: 2, kind: output, shape index: {}]  }
   0x1   :  { %v12_v0 = vld [vmem:[%s147_s0] sm:$0xff] }
   0x2   :  { %7 = vsyncpa [#allocation3], 0  ;;  %v15_v1 = vsel %vm14_vm0, %v12_v0, -inf  ;;  %v117_v2 = vmov 0   ;;  %v13_v3 = vld [vmem:[%s148_s1] sm:$0xff]  ;;  %v24_v4 = vlaneseq  ;;  %vm57_vm3 = vcmask 7168  }
   0x3   :  { %88 = vset.pattern.permute.xlu0 %v117_v2  ;;  %v43_v17 = vcvt.s32.f32 %v13_v3  ;;  %s118_s0 = smov [#allocation2]  }
   0x4   :  { %16 = vmax.xlane.f32.xlu0 %v15_v1  ;;  %v25_v5 = vand.u32 127, %v24_v4  ;;  %s76_s1 = sshll.u32 %s118_s0, 4  ;;  %s77_s1 = int_to_ptr.vmem [resolvable:$true] %s76_s1 }
   0x5   :  { %s95_s14 = scalar_lea.vmem %s77_s1, 128  ;;  %p100_p1 = scmp.lt.s32.totalorder %s77_s1, %s77_s1 }
   0x6   :  { %v38_v7 = vcvt.s32.f32 %v25_v5  ;;  %p96_p0 = scmp.ne.s32.totalorder %s77_s1, %s95_s14  ;;  %p101_p2 = scmp.lt.s32.totalorder %s95_s14, %s95_s14 }
   0x8   :  { %p102_p3 = por %p101_p2, %p100_p1 }
   0xa   :  { %p103_p4 = pnand %p102_p3, %p96_p0 }
  0x1a   :  { %27 = vperm.xlu0 %88, %v13_v3  }
  0x8d   :  { %v17_v6 = vpop.xlane.xlu0 %16 }
  0x8e   :  { %v18_v8 = vsub.f32 %v12_v0, %v17_v6 }
  0x90   :  { %v19_v9 = vmul.f32 1.442695, %v18_v8  ;;  %vm37_vm1 = vcmp.eq.f32.partialorder %v18_v8, 0.0 }
  0x91   :  { %v39_v10 = vsel %vm37_vm1, %v38_v7, 16.0 }
  0x92   :  { %89 = vpow2.f32 %v19_v9  ;;  %v40_v11 = vsel %vm14_vm0, %v39_v10, inf }
  0x93   :  { %41 = vmin.xlane.f32.xlu1 %v40_v11 }
  0x95   :  { %v28_v12 = vpop.permute.xlu0 %27 }
  0x96   :  { %vm29_vm2 = vcmp.eq.s32.totalorder %v25_v5, %v28_v12 }
  0x97   :  { %v30_v15 = vsel %vm29_vm2, %v18_v8, 0.0 }
  0x98   :  { %v31_v16 = vsel %vm14_vm0, %v30_v15, 0.0 }
  0x9f   :  { %v90_v13 = vpop.eup %89 }
  0xa0   :  { %v21_v14 = vsel %vm14_vm0, %v90_v13, 0.0 }
  0xa1   :  { %22 = vadd.xlane.f32.xlu1 %v21_v14 }
  0xa5   :  { %32 = vadd.xlane.f32.xlu1 %v31_v16 }
 0x11c   :  { %v42_v18 = vpop.xlane.xlu1 %41 }
 0x11d   :  { %v44_v19 = vsub.f32 %v42_v18, %v43_v17 }
 0x11f   :  { %v45_v20 = vand.u32 2147483647, %v44_v19 }
 0x121   :  { %v46_v21 = vmul.f32 0.16666667, %v45_v20 }
 0x123   :  { %91 = vtanh.f32 %v46_v21 }
 0x12a   :  { %v23_v22 = vpop.xlane.xlu1 %22 }
 0x12b   :  { %93 = vlog2.f32 %v23_v22 }
 0x12e   :  { %v33_v26 = vpop.xlane.xlu1 %32 }
 0x130   :  { %v92_v23 = vpop.eup %91 }
 0x131   :  { %v48_v28 = vmul.f32 0.25, %v92_v23 }
 0x138   :  { %v94_v24 = vpop.eup %93 }
 0x139   :  { %v35_v25 = vmul.f32 0.6931472, %v94_v24 }
 0x13b   :  { %v36_v27 = vsub.f32 %v35_v25, %v33_v26 }
 0x13d   :  { %v49_v29 = vadd.f32 %v48_v28, %v36_v27 }
 0x13f   :  { %v58_v30 = vsel %vm57_vm3, %v49_v29, 0.0 }
 0x140   :  { %59 = vadd.xlane.f32.xlu1 %v58_v30 }
 0x1c9   :  { %v60_v31 = vpop.xlane.xlu1 %59 }
 0x1ca   :  { %v61_v32 = vrot.slane %v60_v31, 4 }
 0x1cc   :  { %v62_v33 = vadd.f32 %v61_v32, %v60_v31 }
 0x1ce   :  { %v63_v34 = vrot.slane %v62_v33, 2 }
 0x1d0   :  { %v64_v35 = vadd.f32 %v63_v34, %v62_v33 }
 0x1d2   :  { %v65_v36 = vrot.slane %v64_v35, 1 }
 0x1d4   :  { %v66_v37 = vadd.f32 %v65_v36, %v64_v35 }
 0x1d6   :  { %84 = vpush %v66_v37 }
 0x207   :  { %s85_s13 = spop %84 }
 0x208   :  { %v68_v38 = vstv %s85_s13 }
 0x209   :  { %69 = vst [vmem:[#allocation2] sm:$0xff] %v68_v38 }
 0x20a   :  { %106 = shalt.err (!%p103_p4)
}
 0x20b   :  { %79 = dma.vmem_to_hbm [thread:$0]  %s77_s1, 128, %s149_s2, [#allocation3]  }
 0x20c   :  { %115 = dma.done.wait [#allocation3], 128  }
 0x20d   :  { %116 = vsyncadd [#allocation3], 4294967168 }
 0x20e   :  { %83 = vsyncpa [#allocation3], 1 }

</bundles_post_ra>
